<compile_context>
chip_gen: v5e
topology: v5e:2x2
jax: 0.10.0
libtpu: 0.0.40
codegen_flags: <defaults>
</compile_context>

<pallas_src>
import jax
import jax.numpy as jnp
from jax.experimental import pallas as pl
from jax.experimental.pallas import tpu as pltpu


def _gated_attn_body(x_ref, w_ref, b_ref, o_ref, ones_ref):
    x = x_ref[...]
    # Native-dtype MXU matmul with f32 accumulation; f32 bias.
    logits = jnp.dot(x, w_ref[...], preferred_element_type=jnp.float32) + b_ref[...]
    # Row max over all lanes.  For the packed layout this is an upper bound on
    # every segment's max, so exp() stays <= 1 and numerically stable.
    m = jnp.max(logits, axis=-1, keepdims=True)
    e = jnp.exp(logits - m)
    if ones_ref is None:
        denom = jnp.sum(e, axis=-1, keepdims=True)          # plain row softmax
    else:
        # Segmented (per-original-row) sum via block-diagonal ones matmul; the
        # MXU is idle in this mem-bound kernel so this is effectively free.
        denom = jnp.dot(e, ones_ref[...], preferred_element_type=jnp.float32)
    # Exact divide (VPU has slack); guard against a fully-underflowed segment.
    # TODO(synk): a >~87 logit spread between rows packed into the same 128-lane
    # row underflows that segment; fall back to g=1 if such dynamic range occurs.
    attn = e / jnp.maximum(denom, jnp.finfo(jnp.float32).tiny)
    # Gate in f32, single downcast on store (avoids bf16 VPU emulation on v5e).
    o_ref[...] = (x.astype(jnp.float32) * attn).astype(o_ref.dtype)


def _make_kernel(packed: bool):
    if packed:
        def kernel(x_ref, w_ref, b_ref, ones_ref, o_ref):
            _gated_attn_body(x_ref, w_ref, b_ref, o_ref, ones_ref)
    else:
        def kernel(x_ref, w_ref, b_ref, o_ref):
            _gated_attn_body(x_ref, w_ref, b_ref, o_ref, None)
    return kernel


def _sublane_multiple(dtype):
    # f32 -> 8, bf16 -> 16, int8/fp8 -> 32 (vreg packing along sublanes).
    return max(8, 32 // jnp.dtype(dtype).itemsize)


def _vmem_capacity_bytes():
    try:
        cap = int(getattr(pltpu.get_tpu_info(), "vmem_capacity_bytes", 0) or 0)
        if cap > 0:
            return cap
    except Exception:
        pass
    return 64 * 1024 * 1024          # conservative (v7x-sized) fallback


def _choose_tile_rows(rows, lane_w, x_itemsize, resident_bytes, *,
                      vmem_budget_bytes, step_bytes_target, sublane):
    """Largest legal row tile: ~step_bytes_target of x per grid step, within the
    VMEM budget (double-buffered x/out tiles + ~4 f32 temporaries), and with
    >= 4 grid steps (2 per TensorCore on dual-TC chips) when rows allow."""
    per_row = 4 * lane_w * x_itemsize + 4 * lane_w * 4   # 2x2 pipeline bufs + f32 temps
    budget = max(0, vmem_budget_bytes - resident_bytes)
    tm_budget = max(sublane, budget // per_row)
    tm_target = max(sublane, step_bytes_target // (lane_w * x_itemsize))
    tm = min(tm_budget, tm_target, rows)
    if rows >= 4 * sublane:                              # enough work for 4 tiles
        tm = min(tm, rows // 4)
    if tm >= rows:
        return rows                                      # single full-extent block
    return max(sublane, (tm // sublane) * sublane)


def gated_attention(inputs, weight, bias, *, tile_rows=None,
                    step_bytes_target=8 * 1024 * 1024):
    """PatchTSMixerGatedAttention forward.

    inputs: (..., in_size)        any leading dims (batch, channels, patches, ...)
    weight: (out_size, in_size)   PyTorch nn.Linear layout
    bias:   (out_size,)
    """
    orig_shape = inputs.shape
    d = orig_shape[-1]
    assert weight.shape[0] == weight.shape[1] == d, \
        "gating multiply requires in_size == out_size"
    assert bias.shape == (d,)

    rows = 1
    for s in orig_shape[:-1]:
        rows *= s
    x_dtype = inputs.dtype
    x_itemsize = jnp.dtype(x_dtype).itemsize
    w_itemsize = jnp.dtype(weight.dtype).itemsize

    # ---- lane-dense packing: g original rows per 128-lane row when d < 128 ----
    g = 1
    if d < 128 and 128 % d == 0:
        g = 128 // d
        while g > 1 and rows % g != 0:   # keep the wrapper reshape free (no pad)
            g //= 2
    lane_w = g * d
    rows_p = rows // g
    x2d = inputs.reshape(rows_p, lane_w)

    w_t = weight.T                                         # (in, out) Linear layout
    if g > 1:
        w_blk = jnp.kron(jnp.eye(g, dtype=w_t.dtype), w_t)            # block-diag
        ones_blk = jnp.kron(jnp.eye(g, dtype=jnp.float32),
                            jnp.ones((d, d), jnp.float32))            # seg. sum
        b_blk = jnp.tile(bias.astype(jnp.float32), (g,)).reshape(1, lane_w)
    else:
        w_blk = w_t
        ones_blk = None
        b_blk = bias.astype(jnp.float32).reshape(1, lane_w)

    sublane = _sublane_multiple(x_dtype)
    resident = lane_w * lane_w * w_itemsize + lane_w * 4
    if ones_blk is not None:
        resident += lane_w * lane_w * 4

    capacity = _vmem_capacity_bytes()
    vmem_budget = (capacity * 3) // 4        # ~48 MiB on v7x, ~96 MiB on v5e/v6e

    if tile_rows is None:
        tm = _choose_tile_rows(rows_p, lane_w, x_itemsize, resident,
                               vmem_budget_bytes=vmem_budget,
                               step_bytes_target=step_bytes_target,
                               sublane=sublane)
    else:
        tm = min(rows_p, max(sublane, (int(tile_rows) // sublane) * sublane))

    grid = (pl.cdiv(rows_p, tm),)

    # Explicit VMEM arithmetic: 2x double-buffered x/out tiles + ~4 f32 temps
    # (logits, e, attn, x_f32) + resident weight/bias/ones + headroom.
    per_row = 4 * lane_w * x_itemsize + 4 * lane_w * 4
    vmem_limit = min(capacity,
                     max(32 * 1024 * 1024, resident + tm * per_row + (4 << 20)))

    matmuls = 2 if ones_blk is not None else 1
    cost = pl.CostEstimate(
        flops=2 * matmuls * rows_p * lane_w * lane_w,
        transcendentals=rows_p * lane_w,                       # exp per logit
        bytes_accessed=2 * rows_p * lane_w * x_itemsize + resident,
    )

    def resident_spec(shape):
        return pl.BlockSpec(shape, lambda i: (0, 0), pipeline_mode=pl.Buffered(1))

    in_specs = [
        pl.BlockSpec((tm, lane_w), lambda i: (i, 0)),          # x row tile
        resident_spec((lane_w, lane_w)),                       # block-diag weight
        resident_spec((1, lane_w)),                            # bias (f32)
    ]
    args = [x2d, w_blk, b_blk]
    if ones_blk is not None:
        in_specs.append(resident_spec((lane_w, lane_w)))       # block-diag ones
        args.append(ones_blk)

    out = pl.pallas_call(
        _make_kernel(packed=ones_blk is not None),
        out_shape=jax.ShapeDtypeStruct((rows_p, lane_w), x_dtype),
        grid_spec=pltpu.PrefetchScalarGridSpec(
            num_scalar_prefetch=0,
            grid=grid,
            in_specs=in_specs,
            out_specs=pl.BlockSpec((tm, lane_w), lambda i: (i, 0)),
        ),
        compiler_params=pltpu.CompilerParams(
            dimension_semantics=("parallel",),
            vmem_limit_bytes=int(vmem_limit),
        ),
        cost_estimate=cost,
    )(*args)

    return out.reshape(orig_shape)


if __name__ == "__main__":
    # Shapes consistent with PatchTSMixer usage:
    #   (batch, n_channels, num_patches, d_model), in_size == out_size == d_model
    batch, channels, seq, hidden = 2, 4, 8, 32
    in_size = out_size = hidden

    key = jax.random.PRNGKey(0)
    k_x, k_w, k_b = jax.random.split(key, 3)

    inputs = jax.random.normal(k_x, (batch, channels, seq, hidden), dtype=jnp.float32)

    # Deterministic nn.Linear-style init: U(-1/sqrt(in_size), 1/sqrt(in_size))
    bound = 1.0 / (in_size ** 0.5)
    weight = jax.random.uniform(k_w, (out_size, in_size), minval=-bound, maxval=bound,
                                dtype=jnp.float32)
    bias = jax.random.uniform(k_b, (out_size,), minval=-bound, maxval=bound,
                              dtype=jnp.float32)

    out = gated_attention(inputs, weight, bias)
    jax.block_until_ready(out)

    # Reference check in plain JAX (same math as the PyTorch forward).
    logits = inputs @ weight.T + bias
    attn = jax.nn.softmax(logits, axis=-1)
    ref = inputs * attn
    # Tolerance covers the MXU's default-precision f32 matmul passes; the
    # softmax divide itself is exact f32.
    assert jnp.allclose(out, ref, atol=5e-3, rtol=5e-3), "mismatch vs reference"

    print("KERNEL_OK")
</pallas_src>

<mosaic_0001>
module attributes {stable_mosaic.version = 11 : i64} {
  func.func @kernel(%arg0: i32, %arg1: memref<16x128xf32, #tpu.memory_space<vmem>>, %arg2: memref<128x128xf32, #tpu.memory_space<vmem>>, %arg3: memref<1x128xf32, #tpu.memory_space<vmem>>, %arg4: memref<128x128xf32, #tpu.memory_space<vmem>>, %arg5: memref<16x128xf32, #tpu.memory_space<vmem>>) attributes {dimension_semantics = [#tpu.dimension_semantics<parallel>], iteration_bounds = array<i64: 1>, scalar_prefetch = 0 : i64, scratch_operands = 0 : i64, tpu.core_type = #tpu.core_type<tc>, window_params = [{transform_indices = @transform_0, window_bounds = array<i64: 16, 128>}, {pipeline_mode = #tpu.pipeline_mode<synchronous>, transform_indices = @transform_1, window_bounds = array<i64: 128, 128>}, {pipeline_mode = #tpu.pipeline_mode<synchronous>, transform_indices = @transform_2, window_bounds = array<i64: 1, 128>}, {pipeline_mode = #tpu.pipeline_mode<synchronous>, transform_indices = @transform_3, window_bounds = array<i64: 128, 128>}, {transform_indices = @transform_4, window_bounds = array<i64: 16, 128>}]} {
    %c0 = arith.constant 0 : index
    %c0_0 = arith.constant 0 : index
    %0 = vector.load %arg1[%c0, %c0_0] : memref<16x128xf32, #tpu.memory_space<vmem>>, vector<16x128xf32>
    %c0_1 = arith.constant 0 : index
    %c0_2 = arith.constant 0 : index
    %1 = vector.load %arg2[%c0_1, %c0_2] : memref<128x128xf32, #tpu.memory_space<vmem>>, vector<128x128xf32>
    %cst = arith.constant dense<0.000000e+00> : vector<16x128xf32>
    %2 = tpu.matmul %0, %1, %cst {dimension_numbers = #tpu.dot_dimension_numbers<[1], [0], [0], [1], [0, 0, 1, 1], [], []>} : vector<16x128xf32>, vector<128x128xf32>, vector<16x128xf32> -> vector<16x128xf32>
    %c0_3 = arith.constant 0 : index
    %c0_4 = arith.constant 0 : index
    %3 = vector.load %arg3[%c0_3, %c0_4] : memref<1x128xf32, #tpu.memory_space<vmem>>, vector<1x128xf32>
    %4 = vector.broadcast %3 : vector<1x128xf32> to vector<16x128xf32>
    %5 = arith.addf %2, %4 : vector<16x128xf32>
    %cst_5 = arith.constant dense<0xFF800000> : vector<16xf32>
    %6 = vector.multi_reduction <maximumf>, %5, %cst_5 [1] : vector<16x128xf32> to vector<16xf32>
    %7 = vector.shape_cast %6 : vector<16xf32> to vector<16x1xf32>
    %8 = vector.broadcast %7 : vector<16x1xf32> to vector<16x128xf32>
    %9 = arith.subf %5, %8 : vector<16x128xf32>
    %10 = math.exp %9 : vector<16x128xf32>
    %c0_6 = arith.constant 0 : index
    %c0_7 = arith.constant 0 : index
    %11 = vector.load %arg4[%c0_6, %c0_7] : memref<128x128xf32, #tpu.memory_space<vmem>>, vector<128x128xf32>
    %cst_8 = arith.constant dense<0.000000e+00> : vector<16x128xf32>
    %12 = tpu.matmul %10, %11, %cst_8 {dimension_numbers = #tpu.dot_dimension_numbers<[1], [0], [0], [1], [0, 0, 1, 1], [], []>} : vector<16x128xf32>, vector<128x128xf32>, vector<16x128xf32> -> vector<16x128xf32>
    %cst_9 = arith.constant 1.17549435E-38 : f32
    %13 = vector.broadcast %cst_9 : f32 to vector<16x128xf32>
    %14 = arith.maximumf %12, %13 : vector<16x128xf32>
    %15 = arith.divf %10, %14 : vector<16x128xf32>
    %16 = arith.mulf %0, %15 : vector<16x128xf32>
    %c0_10 = arith.constant 0 : index
    %c0_11 = arith.constant 0 : index
    %17 = vector.load %arg5[%c0_10, %c0_11] : memref<16x128xf32, #tpu.memory_space<vmem>>, vector<16x128xf32>
    tpu.vector_store %arg5[%c0_10, %c0_11], %16 {strides = array<i32>} : memref<16x128xf32, #tpu.memory_space<vmem>>, vector<16x128xf32>,
    return
  }
  func.func @transform_0(%arg0: i32) -> (i32, i32) {
    %c0_i32 = arith.constant 0 : i32
    %c0_i32_0 = arith.constant 0 : i32
    return %arg0, %c0_i32 : i32, i32
  }
  func.func @transform_1(%arg0: i32) -> (i32, i32) {
    %c0_i32 = arith.constant 0 : i32
    %c0_i32_0 = arith.constant 0 : i32
    %c0_i32_1 = arith.constant 0 : i32
    return %c0_i32, %c0_i32_0 : i32, i32
  }
  func.func @transform_2(%arg0: i32) -> (i32, i32) {
    %c0_i32 = arith.constant 0 : i32
    %c0_i32_0 = arith.constant 0 : i32
    %c0_i32_1 = arith.constant 0 : i32
    return %c0_i32, %c0_i32_0 : i32, i32
  }
  func.func @transform_3(%arg0: i32) -> (i32, i32) {
    %c0_i32 = arith.constant 0 : i32
    %c0_i32_0 = arith.constant 0 : i32
    %c0_i32_1 = arith.constant 0 : i32
    return %c0_i32, %c0_i32_0 : i32, i32
  }
  func.func @transform_4(%arg0: i32) -> (i32, i32) {
    %c0_i32 = arith.constant 0 : i32
    %c0_i32_0 = arith.constant 0 : i32
    return %arg0, %c0_i32 : i32, i32
  }
}

</mosaic_0001>

<bundles_post_ra>
// kernel: tpu_custom_call.1
= control target key start
LH: loop header
LB: loop body
LE: loop exit
PB: predicated region body
PF: predicated region fallthrough
CT: control target
= control target key end

     0   :  { %9 = vsyncpa [#allocation3], 0  ;;  %s430_s0 = inlined_call_operand.hbm [shape: f32[16,128], index: 0, kind: input, shape index: {}]   ;;  %s431_s1 = inlined_call_operand.hbm [shape: f32[128,128], index: 1, kind: input, shape index: {}]   ;;  %s432_s2 = inlined_call_operand.vmem [shape: f32[1,128], index: 2, kind: input, shape index: {}]   ;;  %s433_s3 = inlined_call_operand.hbm [shape: f32[128,128], index: 3, kind: input, shape index: {}]   ;;  %s434_s4 = inlined_call_operand.hbm [shape: f32[16,128], index: 4, kind: output, shape index: {}]  }
   0x1   :  { %10 = vsyncpa [#allocation6], 0 }
   0x2   :  { %11 = vsyncpa [#allocation4], 0  ;;  %s29_s17 = sshll.u32 %s431_s1, 4  ;;  %s364_s18 = smov [#allocation5]   ;;  %s30_s17 = int_to_ptr.hbm [resolvable:$true] %s29_s17 }
   0x3   :  { %s31_s19 = sshll.u32 %s364_s18, 4  ;;  %s16_s22 = sshll.u32 %s430_s0, 4  ;;  %s32_s19 = int_to_ptr.vmem [resolvable:$true] %s31_s19  ;;  %s17_s22 = int_to_ptr.hbm [resolvable:$true] %s16_s22 }
   0x4   :  { %s365_s23 = smov 128   ;;  %s366_s24 = smov 8  }
   0x5   :  { %37 = dma.hbm_to_vmem [thread:$0]  %s30_s17, 2048, %s32_s19, [#allocation6], %s365_s23, %s365_s23, %s366_s24  }
   0x6   :  { %s367_s25 = smov [#allocation2]   ;;  %s44_s1 = sshll.u32 %s433_s3, 4  ;;  %s45_s1 = int_to_ptr.hbm [resolvable:$true] %s44_s1 }
   0x7   :  { %s18_s26 = sshll.u32 %s367_s25, 4  ;;  %s368_s0 = smov [#allocation7]   ;;  %s19_s26 = int_to_ptr.vmem [resolvable:$true] %s18_s26 }
   0x8   :  { %24 = dma.hbm_to_vmem [thread:$0]  %s17_s22, 256, %s19_s26, [#allocation3], %s365_s23, %s365_s23, %s366_s24  }
   0x9   :  { %s46_s29 = sshll.u32 %s368_s0, 4  ;;  %s47_s29 = int_to_ptr.vmem [resolvable:$true] %s46_s29 }
   0xa   :  { %52 = dma.hbm_to_vmem [thread:$0]  %s45_s1, 2048, %s47_s29, [#allocation6], %s365_s23, %s365_s23, %s366_s24  }
   0xb   :  { %358 = dma.done.wait [#allocation3], 256  }
   0xc   :  { %359 = vsyncadd [#allocation3], 4294967040 }
   0xd   :  { %360 = dma.done.wait [#allocation6], 4096  }
   0xe   :  { %361 = vsyncadd [#allocation6], 4294963200  ;;  %v82_v0 = vld [vmem:[#allocation5 + $0x78] sm:$0xff]  ;;  %v81_v1 = vld [vmem:[#allocation5 + $0x70] sm:$0xff]  ;;  %s201_s8 = sshll.u32 %s434_s4, 4  ;;  %s202_s8 = int_to_ptr.hbm [resolvable:$true] %s201_s8 }
   0xf   :  { %215 = vmatpush.msra.mxu2 %v82_v0  ;;  %87 = vmatpush.msra.mxu0 %v82_v0  ;;  %v80_v2 = vld [vmem:[#allocation5 + $0x68] sm:$0xff]  ;;  %v79_v3 = vld [vmem:[#allocation5 + $0x60] sm:$0xff]  ;;  %v78_v4 = vld [vmem:[#allocation5 + $0x58] sm:$0xff] }
  0x10   :  { %v77_v5 = vld [vmem:[#allocation5 + $0x50] sm:$0xff]  ;;  %v76_v6 = vld [vmem:[#allocation5 + $0x48] sm:$0xff]  ;;  %v75_v7 = vld [vmem:[#allocation5 + $0x40] sm:$0xff] }
  0x11   :  { %216 = vmatpush.msra.mxu2 %v81_v1  ;;  %88 = vmatpush.msra.mxu0 %v81_v1  ;;  %v74_v8 = vld [vmem:[#allocation5 + $0x38] sm:$0xff]  ;;  %v73_v9 = vld [vmem:[#allocation5 + $0x30] sm:$0xff]  ;;  %v72_v10 = vld [vmem:[#allocation5 + $0x28] sm:$0xff] }
  0x12   :  { %v71_v11 = vld [vmem:[#allocation5 + $0x20] sm:$0xff]  ;;  %v70_v12 = vld [vmem:[#allocation5 + $0x18] sm:$0xff]  ;;  %v69_v13 = vld [vmem:[#allocation5 + $0x10] sm:$0xff] }
  0x13   :  { %217 = vmatpush.msra.mxu2 %v80_v2  ;;  %89 = vmatpush.msra.mxu0 %v80_v2  ;;  %v68_v14 = vld [vmem:[#allocation5 + $0x8] sm:$0xff]  ;;  %v67_v15 = vld [vmem:[#allocation5] sm:$0xff]  ;;  %v413_v16 = vld [vmem:[#allocation2 + $0x8] sm:$0xff] }
  0x14   :  { %v415_v17 = vld [vmem:[#allocation2] sm:$0xff]  ;;  %v135_v18 = vld [vmem:[#allocation7 + $0x78] sm:$0xff]  ;;  %v133_v20 = vld [vmem:[#allocation7 + $0x68] sm:$0xff] }
  0x15   :  { %218 = vmatpush.msra.mxu2 %v79_v3  ;;  %90 = vmatpush.msra.mxu0 %v79_v3  ;;  %v134_v19 = vld [vmem:[#allocation7 + $0x70] sm:$0xff]  ;;  %v132_v21 = vld [vmem:[#allocation7 + $0x60] sm:$0xff]  ;;  %v131_v22 = vld [vmem:[#allocation7 + $0x58] sm:$0xff] }
  0x16   :  { %231 = vmatpush.msra.mxu3 %v135_v18  ;;  %136 = vmatpush.msra.mxu1 %v135_v18  ;;  %v130_v23 = vld [vmem:[#allocation7 + $0x50] sm:$0xff]  ;;  %v129_v24 = vld [vmem:[#allocation7 + $0x48] sm:$0xff]  ;;  %v128_v25 = vld [vmem:[#allocation7 + $0x40] sm:$0xff] }
  0x17   :  { %219 = vmatpush.msra.mxu2 %v78_v4  ;;  %91 = vmatpush.msra.mxu0 %v78_v4  ;;  %v127_v26 = vld [vmem:[#allocation7 + $0x38] sm:$0xff]  ;;  %v126_v27 = vld [vmem:[#allocation7 + $0x30] sm:$0xff]  ;;  %v125_v33 = vld [vmem:[#allocation7 + $0x28] sm:$0xff] }
  0x18   :  { %232 = vmatpush.msra.mxu3 %v134_v19  ;;  %137 = vmatpush.msra.mxu1 %v134_v19  ;;  %v253_v28 = vld [vmem:[%s432_s2] ss:$0 sm:$0xff]  ;;  %v124_v34 = vld [vmem:[#allocation7 + $0x20] sm:$0xff]  ;;  %v123_v35 = vld [vmem:[#allocation7 + $0x18] sm:$0xff]  ;;  %s369_s2 = smov [#allocation8]  }
  0x19   :  { %220 = vmatpush.msra.mxu2 %v77_v5  ;;  %92 = vmatpush.msra.mxu0 %v77_v5  ;;  %v122_v36 = vld [vmem:[#allocation7 + $0x10] sm:$0xff]  ;;  %v121_v37 = vld [vmem:[#allocation7 + $0x8] sm:$0xff]  ;;  %v120_v38 = vld [vmem:[#allocation7] sm:$0xff]  ;;  %s199_s5 = sshll.u32 %s369_s2, 4  ;;  %s200_s5 = int_to_ptr.vmem [resolvable:$true] %s199_s5 }
  0x1a   :  { %233 = vmatpush.msra.mxu3 %v133_v20  ;;  %138 = vmatpush.msra.mxu1 %v133_v20 }
  0x1b   :  { %221 = vmatpush.msra.mxu2 %v76_v6  ;;  %93 = vmatpush.msra.mxu0 %v76_v6 }
  0x1c   :  { %234 = vmatpush.msra.mxu3 %v132_v21  ;;  %139 = vmatpush.msra.mxu1 %v132_v21 }
  0x1d   :  { %222 = vmatpush.msra.mxu2 %v75_v7  ;;  %94 = vmatpush.msra.mxu0 %v75_v7 }
  0x1e   :  { %235 = vmatpush.msra.mxu3 %v131_v22  ;;  %140 = vmatpush.msra.mxu1 %v131_v22 }
  0x1f   :  { %223 = vmatpush.msra.mxu2 %v74_v8  ;;  %95 = vmatpush.msra.mxu0 %v74_v8 }
  0x20   :  { %236 = vmatpush.msra.mxu3 %v130_v23  ;;  %141 = vmatpush.msra.mxu1 %v130_v23 }
  0x21   :  { %224 = vmatpush.msra.mxu2 %v73_v9  ;;  %96 = vmatpush.msra.mxu0 %v73_v9 }
  0x22   :  { %237 = vmatpush.msra.mxu3 %v129_v24  ;;  %142 = vmatpush.msra.mxu1 %v129_v24 }
  0x23   :  { %225 = vmatpush.msra.mxu2 %v72_v10  ;;  %97 = vmatpush.msra.mxu0 %v72_v10 }
  0x24   :  { %238 = vmatpush.msra.mxu3 %v128_v25  ;;  %143 = vmatpush.msra.mxu1 %v128_v25 }
  0x25   :  { %226 = vmatpush.msra.mxu2 %v71_v11  ;;  %98 = vmatpush.msra.mxu0 %v71_v11 }
  0x26   :  { %239 = vmatpush.msra.mxu3 %v127_v26  ;;  %144 = vmatpush.msra.mxu1 %v127_v26 }
  0x27   :  { %227 = vmatpush.msra.mxu2 %v70_v12  ;;  %99 = vmatpush.msra.mxu0 %v70_v12 }
  0x28   :  { %240 = vmatpush.msra.mxu3 %v126_v27  ;;  %145 = vmatpush.msra.mxu1 %v126_v27 }
  0x29   :  { %228 = vmatpush.msra.mxu2 %v69_v13  ;;  %100 = vmatpush.msra.mxu0 %v69_v13 }
  0x2a   :  { %241 = vmatpush.msra.mxu3 %v125_v33  ;;  %146 = vmatpush.msra.mxu1 %v125_v33 }
  0x2b   :  { %229 = vmatpush.msra.mxu2 %v68_v14  ;;  %101 = vmatpush.msra.mxu0 %v68_v14 }
  0x2c   :  { %242 = vmatpush.msra.mxu3 %v124_v34  ;;  %147 = vmatpush.msra.mxu1 %v124_v34 }
  0x2d   :  { %230 = vmatpush.msra.mxu2 %v67_v15  ;;  %102 = vmatpush.msra.mxu0 %v67_v15 }
  0x2e   :  { %106 = vmatmul.f32.vlgmr.msra.gmra.mxu2 %v413_v16  ;;  %103 = vmatmul.f32.vlgmr.msra.gmra.mxu0 %v415_v17 }
  0x2f   :  { %243 = vmatpush.msra.mxu3 %v123_v35  ;;  %148 = vmatpush.msra.mxu1 %v123_v35 }
  0x31   :  { %244 = vmatpush.msra.mxu3 %v122_v36  ;;  %149 = vmatpush.msra.mxu1 %v122_v36 }
  0x33   :  { %245 = vmatpush.msra.mxu3 %v121_v37  ;;  %150 = vmatpush.msra.mxu1 %v121_v37 }
  0x35   :  { %246 = vmatpush.msra.mxu3 %v120_v38  ;;  %151 = vmatpush.msra.mxu1 %v120_v38 }
  0xab   :  { %v104_v31 = vpop.f32.mrf.mxu0 }
  0xac   :  { %v105_v32 = vadd.f32 %v253_v28, %v104_v31 }
  0xb1   :  { %v107_v29 = vpop.f32.mrf.mxu2 }
  0xb2   :  { %v108_v30 = vadd.f32 %v253_v28, %v107_v29 }
  0xb4   :  { %112 = vmax.xlane.f32.xlu0 %v108_v30 }
  0xbc   :  { %110 = vmax.xlane.f32.xlu0 %v105_v32 }
 0x127   :  { %v113_v39 = vpop.xlane.xlu0 %112 }
 0x128   :  { %v115_v40 = vsub.f32 %v108_v30, %v113_v39 }
 0x12a   :  { %v118_v41 = vmul.f32 1.442695, %v115_v40 }
 0x12c   :  { %254 = vpow2.f32 %v118_v41 }
 0x12f   :  { %v111_v42 = vpop.xlane.xlu0 %110 }
 0x130   :  { %v114_v43 = vsub.f32 %v105_v32, %v111_v42 }
 0x132   :  { %v255_v44 = vpop.eup %254  ;;  %v116_v45 = vmul.f32 1.442695, %v114_v43 }
 0x133   :  { %155 = vmatmul.f32.vlgmr.msra.gmra.mxu3 %v255_v44 }
 0x134   :  { %256 = vpow2.f32 %v116_v45 }
 0x13a   :  { %v257_v46 = vpop.eup %256 }
 0x13b   :  { %152 = vmatmul.f32.vlgmr.msra.gmra.mxu1 %v257_v46 }
 0x1b6   :  { %v156_v47 = vpop.f32.mrf.mxu3 }
 0x1b7   :  { %v160_v48 = vmax.f32 %v156_v47, 1.1754944e-38 }
 0x1b8   :  { %v153_v49 = vpop.f32.mrf.mxu1 }
 0x1b9   :  { %258 = vrcp.f32 %v160_v48  ;;  %v159_v50 = vmax.f32 %v153_v49, 1.1754944e-38  ;;  %v187_v55 = vand.u32 2147483648, %v160_v48  ;;  %v185_v58 = vand.u32 2147483647, %v160_v48 }
 0x1ba   :  { %vm181_vm1 = vweird.f32 %v160_v48 }
 0x1bb   :  { %260 = vrcp.f32 %v159_v50  ;;  %v172_v61 = vand.u32 2147483648, %v159_v50  ;;  %v188_v62 = vor.u32 1.1754944e-38, %v187_v55  ;;  %v170_v0 = vand.u32 2147483647, %v159_v50 }
 0x1bc   :  { %vm186_vm4 = vcmp.eq.f32.partialorder %v185_v58, 8.507059e+37  ;;  %vm166_vm5 = vweird.f32 %v159_v50 }
 0x1bd   :  { %v173_v4 = vor.u32 1.1754944e-38, %v172_v61  ;;  %vm171_vm7 = vcmp.eq.f32.partialorder %v170_v0, 8.507059e+37 }
 0x1bf   :  { %v259_v51 = vpop.eup %258 }
 0x1c0   :  { %v177_v52 = vmul.f32 %v259_v51, %v160_v48  ;;  %vm182_vm0 = vweird.f32 %v259_v51 }
 0x1c1   :  { %v261_v53 = vpop.eup %260  ;;  %vm183_vm2 = vmor %vm181_vm1, %vm182_vm0 }
 0x1c2   :  { %v178_v54 = vsub.f32 1.0, %v177_v52  ;;  %v162_v56 = vmul.f32 %v261_v53, %v159_v50  ;;  %vm167_vm3 = vweird.f32 %v261_v53 }
 0x1c3   :  { %vm168_vm6 = vmor %vm166_vm5, %vm167_vm3 }
 0x1c4   :  { %v179_v57 = vmul.f32 %v259_v51, %v178_v54  ;;  %v163_v59 = vsub.f32 1.0, %v162_v56 }
 0x1c6   :  { %v180_v60 = vadd.f32 %v259_v51, %v179_v57  ;;  %v164_v63 = vmul.f32 %v261_v53, %v163_v59 }
 0x1c8   :  { %v184_v1 = vsel %vm183_vm2, %v259_v51, %v180_v60  ;;  %v165_v2 = vadd.f32 %v261_v53, %v164_v63 }
 0x1c9   :  { %v189_v3 = vsel %vm186_vm4, %v188_v62, %v184_v1 }
 0x1ca   :  { %v190_v5 = vmul.f32 %v255_v44, %v189_v3  ;;  %v169_v6 = vsel %vm168_vm6, %v261_v53, %v165_v2 }
 0x1cb   :  { %v174_v7 = vsel %vm171_vm7, %v173_v4, %v169_v6 }
 0x1cc   :  { %v192_v8 = vmul.f32 %v190_v5, %v413_v16  ;;  %v175_v9 = vmul.f32 %v257_v46, %v174_v7 }
 0x1ce   :  { %194 = vst [vmem:[#allocation8 + $0x8] sm:$0xff] %v192_v8  ;;  %v191_v10 = vmul.f32 %v175_v9, %v415_v17 }
 0x1d0   :  { %193 = vst [vmem:[#allocation8] sm:$0xff] %v191_v10 }
 0x1d1   :  { %207 = dma.vmem_to_hbm [thread:$0]  %s200_s5, 256, %s202_s8, [#allocation4], %s365_s23, %s365_s23, %s366_s24  }
 0x1d2   :  { %362 = dma.done.wait [#allocation4], 256  }
 0x1d3   :  { %363 = vsyncadd [#allocation4], 4294967040 }
 0x1d4   :  { %212 = vsyncpa [#allocation3], 1 }
 0x1d5   :  { %213 = vsyncpa [#allocation6], 1 }
 0x1d6   :  { %214 = vsyncpa [#allocation4], 1 }

</bundles_post_ra>
